<compile_context>
chip_gen: v6e
topology: v6e:2x2x1
jax: 0.10.0
libtpu: 0.0.40
codegen_flags: <defaults>
</compile_context>

<pallas_src>
import jax
import jax.numpy as jnp
from jax.experimental import pallas as pl
from jax.experimental.pallas import tpu as pltpu

LEAKY_SLOPE = 0.01   # F.leaky_relu default negative_slope
HID = 64             # logical hidden width
BOT = 4              # logical bottleneck width
HID_PAD = 128        # lane-padded hidden width (VMEM-only)
BOT_PAD = 128        # lane-padded bottleneck width (VMEM-only)
SUBLANES = 8
LANES = 128


def _leaky_relu(x):
    return jnp.where(x >= 0, x, LEAKY_SLOPE * x)


def _round_up(n, m):
    return (n + m - 1) // m * m


def _cdiv(a, b):
    return (a + b - 1) // b


# ---------------------------------------------------------------------------
# Kernel: one (tb, F) batch tile through the whole 4-layer MLP.
# Weights/biases use constant index_maps -> DMA'd once, resident in VMEM.
# ---------------------------------------------------------------------------
def autoencoder_kernel(x_ref,
                       w1_ref, b1_ref,
                       w2_ref, b2_ref,
                       w3_ref, b3_ref,
                       w4_ref, b4_ref,
                       out_ref):
    cdt = w1_ref.dtype                      # matmul operand dtype (bf16 or f32)
    x = x_ref[...].astype(cdt)              # (tb, F); no-op cast if x is bf16

    # encoder
    h = jnp.dot(x, w1_ref[...], preferred_element_type=jnp.float32) + b1_ref[...]
    h = _leaky_relu(h)                                                  # (tb, 128)
    h = jnp.dot(h.astype(cdt), w2_ref[...],
                preferred_element_type=jnp.float32) + b2_ref[...]
    h = _leaky_relu(h)                                                  # (tb, 128)

    # decoder
    h = jnp.dot(h.astype(cdt), w3_ref[...],
                preferred_element_type=jnp.float32) + b3_ref[...]
    h = _leaky_relu(h)                                                  # (tb, 128)
    logits = jnp.dot(h.astype(cdt), w4_ref[...],
                     preferred_element_type=jnp.float32) + b4_ref[...]  # (tb, F)
    out_ref[...] = jax.nn.sigmoid(logits).astype(out_ref.dtype)


# ---------------------------------------------------------------------------
# Parameter preparation: zero-pad only the hidden/bottleneck dims to 128 lanes,
# cast weights to the matmul compute dtype (biases stay f32 — added after the
# f32 accumulation).  The feature dim F is NOT padded.
# ---------------------------------------------------------------------------
def pad_params(params, num_features, compute_dtype=jnp.bfloat16):
    F = num_features

    def pad2d(mat, shape):
        out = jnp.zeros(shape, mat.dtype)
        return out.at[: mat.shape[0], : mat.shape[1]].set(mat)

    return {
        "w1": pad2d(params["w1"], (F, HID_PAD)).astype(compute_dtype),
        "b1": pad2d(params["b1"], (1, HID_PAD)),
        "w2": pad2d(params["w2"], (HID_PAD, BOT_PAD)).astype(compute_dtype),
        "b2": pad2d(params["b2"], (1, BOT_PAD)),
        "w3": pad2d(params["w3"], (BOT_PAD, HID_PAD)).astype(compute_dtype),
        "b3": pad2d(params["b3"], (1, HID_PAD)),
        "w4": pad2d(params["w4"], (HID_PAD, F)).astype(compute_dtype),
        "b4": pad2d(params["b4"], (1, F)),
    }


# ---------------------------------------------------------------------------
# VMEM capacity query (generation-aware) with a conservative fallback.
# ---------------------------------------------------------------------------
def _vmem_capacity_bytes():
    try:
        return int(pltpu.get_tpu_info().vmem_capacity_bytes)
    except Exception:
        return 64 * 1024 * 1024          # v7x per-TC size = safe lower bound


# ---------------------------------------------------------------------------
# Batch-tile picker.  Footprint model counts:
#   * 2x buffers for EVERY pipelined input (weights/biases included) and the
#     output block,
#   * the in-kernel (tb, F) compute-dtype copy of x, the (tb, F) f32 logits,
#     the cast sigmoid result, and ~6 live 128-wide f32 activation rows.
# Rounded to a multiple of 128 for large tiles (MXU M-dim / bf16 sublane
# packing), capped so the megacore-parallel grid keeps >= 4 steps.
# ---------------------------------------------------------------------------
def _pick_batch_tile(batch, F, in_itemsize, out_itemsize, w_itemsize,
                     vmem_budget_bytes):
    weight_elems = F * HID_PAD + HID_PAD * BOT_PAD + BOT_PAD * HID_PAD + HID_PAD * F
    bias_bytes = (HID_PAD + BOT_PAD + HID_PAD + F) * 4
    weight_bytes = 2 * (weight_elems * w_itemsize + bias_bytes)   # double-buffered

    per_row = (2 * F * in_itemsize        # x tile (double-buffered)
               + 2 * F * out_itemsize     # out tile (double-buffered)
               + F * w_itemsize           # compute-dtype copy of x
               + F * 4                    # f32 logits
               + F * out_itemsize         # cast sigmoid output
               + 6 * HID_PAD * 4)         # live 128-wide f32 activations / casts

    avail = vmem_budget_bytes - weight_bytes
    if avail < SUBLANES * per_row:
        raise ValueError(
            f"Autoencoder weights ({weight_bytes} B double-buffered) leave no "
            f"room for even an 8-row batch tile in a {vmem_budget_bytes} B "
            f"VMEM budget; reduce num_features or use bf16 weights.")

    tb = avail // per_row
    b8 = _round_up(batch, SUBLANES)
    tb = min(tb, 8192, b8)

    # Keep >= 4 grid steps (>= 2 per core on v7x megacore) when batch allows.
    if b8 >= 4 * 256:
        tb = min(tb, _round_up(_cdiv(b8, 4), LANES))

    if tb >= 256:
        tb = (tb // LANES) * LANES
    else:
        tb = max(SUBLANES, (tb // SUBLANES) * SUBLANES)
    return int(tb)


# ---------------------------------------------------------------------------
# Host wrapper.  x: (B, F), any float dtype (f32 exact path, bf16 fast path).
# No host-side padding / slicing: ragged last batch block is masked by Pallas.
# ---------------------------------------------------------------------------
def autoencoder_forward(x, padded_params, *, out_dtype=None, batch_tile=None):
    B, F = x.shape
    p = padded_params
    assert p["w1"].shape[0] == F, "padded params don't match num_features"
    out_dtype = out_dtype or x.dtype

    in_sz = jnp.dtype(x.dtype).itemsize
    out_sz = jnp.dtype(out_dtype).itemsize
    w_sz = jnp.dtype(p["w1"].dtype).itemsize

    vmem_cap = _vmem_capacity_bytes()
    vmem_budget = int(vmem_cap * 0.55)
    vmem_limit = min(int(vmem_cap * 0.80), 112 * 1024 * 1024)

    tb = batch_tile or _pick_batch_tile(B, F, in_sz, out_sz, w_sz, vmem_budget)
    grid = (_cdiv(B, tb),)

    act_in_spec = pl.BlockSpec((tb, F), lambda i: (i, 0))
    act_out_spec = pl.BlockSpec((tb, F), lambda i: (i, 0))

    def resident(arr):
        # Same block every grid step -> DMA'd once, stays in VMEM.
        return pl.BlockSpec(arr.shape, lambda i: (0, 0))

    # Advisory cost estimate (memory-bound; ~2 flops/MAC, 1 exp per output).
    flops = 2 * B * (2 * F * HID_PAD + 2 * HID_PAD * BOT_PAD)
    weight_stream_bytes = sum(int(v.size) * jnp.dtype(v.dtype).itemsize
                              for v in p.values())
    cost = pl.CostEstimate(
        flops=int(flops),
        transcendentals=int(B * F),
        bytes_accessed=int(B * F * (in_sz + out_sz) + weight_stream_bytes),
    )

    return pl.pallas_call(
        autoencoder_kernel,
        out_shape=jax.ShapeDtypeStruct((B, F), out_dtype),
        grid_spec=pl.GridSpec(
            grid=grid,
            in_specs=[
                act_in_spec,
                resident(p["w1"]), resident(p["b1"]),
                resident(p["w2"]), resident(p["b2"]),
                resident(p["w3"]), resident(p["b3"]),
                resident(p["w4"]), resident(p["b4"]),
            ],
            out_specs=act_out_spec,
        ),
        compiler_params=pltpu.CompilerParams(
            dimension_semantics=("parallel",),      # megacore split on v7x
            vmem_limit_bytes=vmem_limit,
        ),
        cost_estimate=cost,
    )(x, p["w1"], p["b1"], p["w2"], p["b2"],
      p["w3"], p["b3"], p["w4"], p["b4"])


# ---------------------------------------------------------------------------
# Init + pure-JAX reference (PyTorch-equivalent semantics)
# ---------------------------------------------------------------------------
def init_params(key, num_features):
    """torch.nn.Linear default init (uniform +/- 1/sqrt(fan_in)); W stored (in,out)."""
    dims = [(num_features, HID), (HID, BOT), (BOT, HID), (HID, num_features)]
    params = {}
    for i, (fan_in, fan_out) in enumerate(dims, start=1):
        key, kw, kb = jax.random.split(key, 3)
        bound = 1.0 / jnp.sqrt(jnp.float32(fan_in))
        params[f"w{i}"] = jax.random.uniform(
            kw, (fan_in, fan_out), jnp.float32, -bound, bound)
        params[f"b{i}"] = jax.random.uniform(
            kb, (1, fan_out), jnp.float32, -bound, bound)
    return params


def reference_forward(x, params):
    h = _leaky_relu(x @ params["w1"] + params["b1"])
    h = _leaky_relu(h @ params["w2"] + params["b2"])
    h = _leaky_relu(h @ params["w3"] + params["b3"])
    return jax.nn.sigmoid(h @ params["w4"] + params["b4"])


if __name__ == "__main__":
    num_features = 32
    batch = 8

    key = jax.random.PRNGKey(0)
    key_x, key_p = jax.random.split(key)
    x = jax.random.normal(key_x, (batch, num_features), jnp.float32)
    params = init_params(key_p, num_features)

    ref = reference_forward(x, params)

    # Fast weights: bf16 matmul operands (full MXU rate, half weight DMA),
    # f32 activations streamed, f32 accumulation / sigmoid.
    p_bf16 = pad_params(params, num_features, compute_dtype=jnp.bfloat16)
    out_bf16w = jax.block_until_ready(autoencoder_forward(x, p_bf16))
    assert out_bf16w.shape == (batch, num_features)
    assert jnp.allclose(out_bf16w, ref, atol=3e-2, rtol=3e-2), "bf16-weight path mismatch"

    # Fastest streaming path: bf16 activations in AND out (halves HBM traffic).
    out_bf16io = jax.block_until_ready(
        autoencoder_forward(x.astype(jnp.bfloat16), p_bf16,
                            out_dtype=jnp.bfloat16))
    assert out_bf16io.shape == (batch, num_features)
    assert jnp.allclose(out_bf16io.astype(jnp.float32), ref,
                        atol=5e-2, rtol=5e-2), "bf16-io path mismatch"

    # Exact path: f32 end-to-end, tight tolerance vs the PyTorch-equivalent reference.
    p_f32 = pad_params(params, num_features, compute_dtype=jnp.float32)
    out_f32 = jax.block_until_ready(autoencoder_forward(x, p_f32))
    assert out_f32.shape == (batch, num_features)
    assert jnp.allclose(out_f32, ref, atol=1e-4, rtol=1e-4), "f32 path mismatch"

    print("KERNEL_OK")
</pallas_src>

<mosaic_0001>
module attributes {stable_mosaic.version = 11 : i64} {
  func.func @autoencoder_kernel(%arg0: i32, %arg1: memref<8x32xf32, #tpu.memory_space<vmem>>, %arg2: memref<32x128xbf16, #tpu.memory_space<vmem>>, %arg3: memref<1x128xf32, #tpu.memory_space<vmem>>, %arg4: memref<128x128xbf16, #tpu.memory_space<vmem>>, %arg5: memref<1x128xf32, #tpu.memory_space<vmem>>, %arg6: memref<128x128xbf16, #tpu.memory_space<vmem>>, %arg7: memref<1x128xf32, #tpu.memory_space<vmem>>, %arg8: memref<128x32xbf16, #tpu.memory_space<vmem>>, %arg9: memref<1x32xf32, #tpu.memory_space<vmem>>, %arg10: memref<8x32xf32, #tpu.memory_space<vmem>>) attributes {dimension_semantics = [#tpu.dimension_semantics<parallel>], iteration_bounds = array<i64: 1>, scalar_prefetch = 0 : i64, scratch_operands = 0 : i64, tpu.core_type = #tpu.core_type<tc>, window_params = [{transform_indices = @transform_0, window_bounds = array<i64: 8, 32>}, {pipeline_mode = #tpu.pipeline_mode<synchronous>, transform_indices = @transform_1, window_bounds = array<i64: 32, 128>}, {pipeline_mode = #tpu.pipeline_mode<synchronous>, transform_indices = @transform_2, window_bounds = array<i64: 1, 128>}, {pipeline_mode = #tpu.pipeline_mode<synchronous>, transform_indices = @transform_3, window_bounds = array<i64: 128, 128>}, {pipeline_mode = #tpu.pipeline_mode<synchronous>, transform_indices = @transform_4, window_bounds = array<i64: 1, 128>}, {pipeline_mode = #tpu.pipeline_mode<synchronous>, transform_indices = @transform_5, window_bounds = array<i64: 128, 128>}, {pipeline_mode = #tpu.pipeline_mode<synchronous>, transform_indices = @transform_6, window_bounds = array<i64: 1, 128>}, {pipeline_mode = #tpu.pipeline_mode<synchronous>, transform_indices = @transform_7, window_bounds = array<i64: 128, 32>}, {pipeline_mode = #tpu.pipeline_mode<synchronous>, transform_indices = @transform_8, window_bounds = array<i64: 1, 32>}, {transform_indices = @transform_9, window_bounds = array<i64: 8, 32>}]} {
    %c0 = arith.constant 0 : index
    %c0_0 = arith.constant 0 : index
    %0 = vector.load %arg1[%c0, %c0_0] : memref<8x32xf32, #tpu.memory_space<vmem>>, vector<8x32xf32>
    %1 = arith.truncf %0 : vector<8x32xf32> to vector<8x32xbf16>
    %c0_1 = arith.constant 0 : index
    %c0_2 = arith.constant 0 : index
    %2 = vector.load %arg2[%c0_1, %c0_2] : memref<32x128xbf16, #tpu.memory_space<vmem>>, vector<32x128xbf16>
    %cst = arith.constant dense<0.000000e+00> : vector<8x128xf32>
    %3 = tpu.matmul %1, %2, %cst {dimension_numbers = #tpu.dot_dimension_numbers<[1], [0], [0], [1], [0, 0, 1, 1], [], []>} : vector<8x32xbf16>, vector<32x128xbf16>, vector<8x128xf32> -> vector<8x128xf32>
    %c0_3 = arith.constant 0 : index
    %c0_4 = arith.constant 0 : index
    %4 = vector.load %arg3[%c0_3, %c0_4] : memref<1x128xf32, #tpu.memory_space<vmem>>, vector<1x128xf32>
    %5 = vector.broadcast %4 : vector<1x128xf32> to vector<8x128xf32>
    %6 = arith.addf %3, %5 : vector<8x128xf32>
    %cst_5 = arith.constant 0.000000e+00 : f32
    %7 = vector.broadcast %cst_5 : f32 to vector<8x128xf32>
    %8 = arith.cmpf oge, %6, %7 : vector<8x128xf32>
    %cst_6 = arith.constant 0.00999999977 : f32
    %9 = vector.broadcast %cst_6 : f32 to vector<8x128xf32>
    %10 = arith.mulf %9, %6 : vector<8x128xf32>
    %11 = arith.select %8, %6, %10 : vector<8x128xi1>, vector<8x128xf32>
    %12 = arith.truncf %11 : vector<8x128xf32> to vector<8x128xbf16>
    %c0_7 = arith.constant 0 : index
    %c0_8 = arith.constant 0 : index
    %13 = vector.load %arg4[%c0_7, %c0_8] : memref<128x128xbf16, #tpu.memory_space<vmem>>, vector<128x128xbf16>
    %cst_9 = arith.constant dense<0.000000e+00> : vector<8x128xf32>
    %14 = tpu.matmul %12, %13, %cst_9 {dimension_numbers = #tpu.dot_dimension_numbers<[1], [0], [0], [1], [0, 0, 1, 1], [], []>} : vector<8x128xbf16>, vector<128x128xbf16>, vector<8x128xf32> -> vector<8x128xf32>
    %c0_10 = arith.constant 0 : index
    %c0_11 = arith.constant 0 : index
    %15 = vector.load %arg5[%c0_10, %c0_11] : memref<1x128xf32, #tpu.memory_space<vmem>>, vector<1x128xf32>
    %16 = vector.broadcast %15 : vector<1x128xf32> to vector<8x128xf32>
    %17 = arith.addf %14, %16 : vector<8x128xf32>
    %cst_12 = arith.constant 0.000000e+00 : f32
    %18 = vector.broadcast %cst_12 : f32 to vector<8x128xf32>
    %19 = arith.cmpf oge, %17, %18 : vector<8x128xf32>
    %cst_13 = arith.constant 0.00999999977 : f32
    %20 = vector.broadcast %cst_13 : f32 to vector<8x128xf32>
    %21 = arith.mulf %20, %17 : vector<8x128xf32>
    %22 = arith.select %19, %17, %21 : vector<8x128xi1>, vector<8x128xf32>
    %23 = arith.truncf %22 : vector<8x128xf32> to vector<8x128xbf16>
    %c0_14 = arith.constant 0 : index
    %c0_15 = arith.constant 0 : index
    %24 = vector.load %arg6[%c0_14, %c0_15] : memref<128x128xbf16, #tpu.memory_space<vmem>>, vector<128x128xbf16>
    %cst_16 = arith.constant dense<0.000000e+00> : vector<8x128xf32>
    %25 = tpu.matmul %23, %24, %cst_16 {dimension_numbers = #tpu.dot_dimension_numbers<[1], [0], [0], [1], [0, 0, 1, 1], [], []>} : vector<8x128xbf16>, vector<128x128xbf16>, vector<8x128xf32> -> vector<8x128xf32>
    %c0_17 = arith.constant 0 : index
    %c0_18 = arith.constant 0 : index
    %26 = vector.load %arg7[%c0_17, %c0_18] : memref<1x128xf32, #tpu.memory_space<vmem>>, vector<1x128xf32>
    %27 = vector.broadcast %26 : vector<1x128xf32> to vector<8x128xf32>
    %28 = arith.addf %25, %27 : vector<8x128xf32>
    %cst_19 = arith.constant 0.000000e+00 : f32
    %29 = vector.broadcast %cst_19 : f32 to vector<8x128xf32>
    %30 = arith.cmpf oge, %28, %29 : vector<8x128xf32>
    %cst_20 = arith.constant 0.00999999977 : f32
    %31 = vector.broadcast %cst_20 : f32 to vector<8x128xf32>
    %32 = arith.mulf %31, %28 : vector<8x128xf32>
    %33 = arith.select %30, %28, %32 : vector<8x128xi1>, vector<8x128xf32>
    %34 = arith.truncf %33 : vector<8x128xf32> to vector<8x128xbf16>
    %c0_21 = arith.constant 0 : index
    %c0_22 = arith.constant 0 : index
    %35 = vector.load %arg8[%c0_21, %c0_22] : memref<128x32xbf16, #tpu.memory_space<vmem>>, vector<128x32xbf16>
    %cst_23 = arith.constant dense<0.000000e+00> : vector<8x32xf32>
    %36 = tpu.matmul %34, %35, %cst_23 {dimension_numbers = #tpu.dot_dimension_numbers<[1], [0], [0], [1], [0, 0, 1, 1], [], []>} : vector<8x128xbf16>, vector<128x32xbf16>, vector<8x32xf32> -> vector<8x32xf32>
    %c0_24 = arith.constant 0 : index
    %c0_25 = arith.constant 0 : index
    %37 = vector.load %arg9[%c0_24, %c0_25] : memref<1x32xf32, #tpu.memory_space<vmem>>, vector<1x32xf32>
    %38 = vector.broadcast %37 : vector<1x32xf32> to vector<8x32xf32>
    %39 = arith.addf %36, %38 : vector<8x32xf32>
    %40 = arith.negf %39 : vector<8x32xf32>
    %41 = math.exp %40 : vector<8x32xf32>
    %cst_26 = arith.constant 1.000000e+00 : f32
    %42 = vector.broadcast %cst_26 : f32 to vector<8x32xf32>
    %43 = arith.addf %42, %41 : vector<8x32xf32>
    %44 = arith.divf %42, %43 : vector<8x32xf32>
    %c0_27 = arith.constant 0 : index
    %c0_28 = arith.constant 0 : index
    %45 = vector.load %arg10[%c0_27, %c0_28] : memref<8x32xf32, #tpu.memory_space<vmem>>, vector<8x32xf32>
    tpu.vector_store %arg10[%c0_27, %c0_28], %44 {strides = array<i32>} : memref<8x32xf32, #tpu.memory_space<vmem>>, vector<8x32xf32>,
    return
  }
  func.func @transform_0(%arg0: i32) -> (i32, i32) {
    %c0_i32 = arith.constant 0 : i32
    %c0_i32_0 = arith.constant 0 : i32
    return %arg0, %c0_i32 : i32, i32
  }
  func.func @transform_1(%arg0: i32) -> (i32, i32) {
    %c0_i32 = arith.constant 0 : i32
    %c0_i32_0 = arith.constant 0 : i32
    %c0_i32_1 = arith.constant 0 : i32
    return %c0_i32, %c0_i32_0 : i32, i32
  }
  func.func @transform_2(%arg0: i32) -> (i32, i32) {
    %c0_i32 = arith.constant 0 : i32
    %c0_i32_0 = arith.constant 0 : i32
    %c0_i32_1 = arith.constant 0 : i32
    return %c0_i32, %c0_i32_0 : i32, i32
  }
  func.func @transform_3(%arg0: i32) -> (i32, i32) {
    %c0_i32 = arith.constant 0 : i32
    %c0_i32_0 = arith.constant 0 : i32
    %c0_i32_1 = arith.constant 0 : i32
    return %c0_i32, %c0_i32_0 : i32, i32
  }
  func.func @transform_4(%arg0: i32) -> (i32, i32) {
    %c0_i32 = arith.constant 0 : i32
    %c0_i32_0 = arith.constant 0 : i32
    %c0_i32_1 = arith.constant 0 : i32
    return %c0_i32, %c0_i32_0 : i32, i32
  }
  func.func @transform_5(%arg0: i32) -> (i32, i32) {
    %c0_i32 = arith.constant 0 : i32
    %c0_i32_0 = arith.constant 0 : i32
    %c0_i32_1 = arith.constant 0 : i32
    return %c0_i32, %c0_i32_0 : i32, i32
  }
  func.func @transform_6(%arg0: i32) -> (i32, i32) {
    %c0_i32 = arith.constant 0 : i32
    %c0_i32_0 = arith.constant 0 : i32
    %c0_i32_1 = arith.constant 0 : i32
    return %c0_i32, %c0_i32_0 : i32, i32
  }
  func.func @transform_7(%arg0: i32) -> (i32, i32) {
    %c0_i32 = arith.constant 0 : i32
    %c0_i32_0 = arith.constant 0 : i32
    %c0_i32_1 = arith.constant 0 : i32
    return %c0_i32, %c0_i32_0 : i32, i32
  }
  func.func @transform_8(%arg0: i32) -> (i32, i32) {
    %c0_i32 = arith.constant 0 : i32
    %c0_i32_0 = arith.constant 0 : i32
    %c0_i32_1 = arith.constant 0 : i32
    return %c0_i32, %c0_i32_0 : i32, i32
  }
  func.func @transform_9(%arg0: i32) -> (i32, i32) {
    %c0_i32 = arith.constant 0 : i32
    %c0_i32_0 = arith.constant 0 : i32
    return %arg0, %c0_i32 : i32, i32
  }
}

</mosaic_0001>

<bundles_post_ra>
// kernel: tpu_custom_call.1
= control target key start
LH: loop header
LB: loop body
LE: loop exit
PB: predicated region body
PF: predicated region fallthrough
CT: control target
= control target key end

     0   :  { %14 = vsyncpa [#allocation3], 0  ;;  %s898_s0 = inlined_call_operand.hbm [shape: f32[8,32], index: 0, kind: input, shape index: {}]   ;;  %s899_s1 = inlined_call_operand.vmem [shape: bf16[32,128], index: 1, kind: input, shape index: {}]   ;;  %s900_s2 = inlined_call_operand.vmem [shape: f32[1,128], index: 2, kind: input, shape index: {}]   ;;  %s901_s3 = inlined_call_operand.vmem [shape: bf16[128,128], index: 3, kind: input, shape index: {}]   ;;  %s902_s4 = inlined_call_operand.vmem [shape: f32[1,128], index: 4, kind: input, shape index: {}]   ;;  %s903_s5 = inlined_call_operand.hbm [shape: bf16[128,128], index: 5, kind: input, shape index: {}]   ;;  %s904_s6 = inlined_call_operand.vmem [shape: f32[1,128], index: 6, kind: input, shape index: {}]   ;;  %s905_s7 = inlined_call_operand.vmem [shape: bf16[128,32], index: 7, kind: input, shape index: {}]   ;;  %s906_s8 = inlined_call_operand.vmem [shape: f32[1,32], index: 8, kind: input, shape index: {}]   ;;  %s907_s9 = inlined_call_operand.hbm [shape: f32[8,32], index: 9, kind: output, shape index: {}]  }
   0x1   :  { %15 = vsyncpa [#allocation6], 0 }
   0x2   :  { %16 = vsyncpa [#allocation4], 0  ;;  %s730_s30 = smov [#allocation2]   ;;  %s731_s11 = smov [#allocation5]  }
   0x3   :  { %s23_s10 = sshll.u32 %s730_s30, 4  ;;  %s40_s12 = sshll.u32 %s731_s11, 4  ;;  %s24_s10 = int_to_ptr.vmem [resolvable:$true] %s23_s10  ;;  %s41_s12 = int_to_ptr.vmem [resolvable:$true] %s40_s12 }
   0x4   :  { %s672_s13 = scalar_lea.vmem %s24_s10, 128  ;;  %p677_p1 = scmp.lt.s32.totalorder %s24_s10, %s24_s10 }
   0x5   :  { %p673_p0 = scmp.ne.s32.totalorder %s24_s10, %s672_s13  ;;  %p678_p2 = scmp.lt.s32.totalorder %s672_s13, %s672_s13 }
   0x7   :  { %p679_p3 = por %p678_p2, %p677_p1 }
   0x9   :  { %p680_p4 = pnand %p679_p3, %p673_p0 }
   0xb   :  { %683 = shalt.err (!%p680_p4)
}
   0xc   :  { %26 = dma.hbm_to_vmem [thread:$0]  %s898_s0, 128, %s24_s10, [#allocation3]  }
   0xd   :  { %s692_s16 = scalar_lea.vmem %s41_s12, 1024  ;;  %p697_p6 = scmp.lt.s32.totalorder %s41_s12, %s41_s12 }
   0xe   :  { %p693_p5 = scmp.ne.s32.totalorder %s41_s12, %s692_s16  ;;  %p698_p7 = scmp.lt.s32.totalorder %s692_s16, %s692_s16 }
  0x10   :  { %p699_p8 = por %p698_p7, %p697_p6 }
  0x12   :  { %p700_p9 = pnand %p699_p8, %p693_p5 }
  0x14   :  { %703 = shalt.err (!%p700_p9)
}
  0x15   :  { %s732_s17 = smov 64   ;;  %s733_s18 = smov 4  }
  0x16   :  { %46 = dma.hbm_to_vmem [thread:$0]  %s903_s5, 1024, %s41_s12, [#allocation6], %s732_s17, %s732_s17, %s733_s18  }
  0x17   :  { %724 = dma.done.wait [#allocation3], 128  }
  0x18   :  { %725 = vsyncadd [#allocation3], 4294967168 }
  0x19   :  { %726 = dma.done.wait [#allocation6], 1024  }
  0x1a   :  { %727 = vsyncadd [#allocation6], 4294966272  ;;  %v734_v0 = vmov 0.0   ;;  %vm735_vm0 = vmmov 0   ;;  %v634_v1 = vld [vmem:[%s899_s1 + $0x8] sm:$0xff]   ;;  %v635_v2 = vld [vmem:[%s899_s1] sm:$0xff]  }
  0x1b   :  { %559 = vmatprep.subr.bf16.mxu0 %v734_v0  ;;  %563 = vmatprep.mubr.msk.bf16.mxu0 %vm735_vm0, %v734_v0  ;;  %v60_v3 = vld [vmem:[#allocation2] sm:$0xff]  ;;  %v636_v4 = vld [vmem:[%s901_s3 + $0x38] sm:$0xff]   ;;  %v637_v6 = vld [vmem:[%s901_s3 + $0x30] sm:$0xff]   ;;  %vm85_vm1 = vcmask 261120  }
  0x1c   :  { %567 = vmatprep.subr.bf16.mxu1 %v734_v0  ;;  %583 = vmatprep.mubr.msk.bf16.mxu1 %vm735_vm0, %v734_v0  ;;  %v61_v5 = vpack.c.bf16 %v60_v3, %v60_v3  ;;  %v638_v7 = vld [vmem:[%s901_s3 + $0x28] sm:$0xff]   ;;  %v639_v8 = vld [vmem:[%s901_s3 + $0x20] sm:$0xff]   ;;  %v640_v9 = vld [vmem:[%s901_s3 + $0x18] sm:$0xff]  }
  0x1d   :  { %560 = vmatpush3.bf16.msra.mxu0 %v634_v1  ;;  %568 = vmatpush3.bf16.msra.mxu1 %v636_v4  ;;  %v641_v10 = vld [vmem:[%s901_s3 + $0x10] sm:$0xff]   ;;  %v642_v11 = vld [vmem:[%s901_s3 + $0x8] sm:$0xff]   ;;  %v643_v12 = vld [vmem:[%s901_s3] sm:$0xff]  }
  0x1e   :  { %561 = vmatprep.subr.bf16.mxu0 %v734_v0  ;;  %569 = vmatprep.subr.bf16.mxu1 %v734_v0  ;;  %v644_v13 = vld [vmem:[#allocation5 + $0x38] sm:$0xff]   ;;  %v645_v14 = vld [vmem:[#allocation5 + $0x30] sm:$0xff]   ;;  %v646_v15 = vld [vmem:[#allocation5 + $0x28] sm:$0xff]  }
  0x1f   :  { %v647_v16 = vld [vmem:[#allocation5 + $0x20] sm:$0xff]   ;;  %v648_v17 = vld [vmem:[#allocation5 + $0x18] sm:$0xff]   ;;  %v649_v18 = vld [vmem:[#allocation5 + $0x10] sm:$0xff]  }
  0x20   :  { %v497_v19 = vld [vmem:[%s900_s2] ss:$0 sm:$0xff]  ;;  %v650_v28 = vld [vmem:[#allocation5 + $0x8] sm:$0xff]   ;;  %v651_v29 = vld [vmem:[#allocation5] sm:$0xff]  }
  0x21   :  { %562 = vmatpush3.bf16.msra.mxu0 %v635_v2  ;;  %570 = vmatpush3.bf16.msra.mxu1 %v637_v6  ;;  %v652_v30 = vld [vmem:[%s905_s7 + $0x38] sm:$0xff]   ;;  %v653_v31 = vld [vmem:[%s905_s7 + $0x30] sm:$0xff]   ;;  %v654_v32 = vld [vmem:[%s905_s7 + $0x28] sm:$0xff]  }
  0x22   :  { %587 = vmatprep.subr.bf16.mxu0 %v734_v0  ;;  %571 = vmatprep.subr.bf16.mxu1 %v734_v0  ;;  %v655_v33 = vld [vmem:[%s905_s7 + $0x20] sm:$0xff]   ;;  %v656_v34 = vld [vmem:[%s905_s7 + $0x18] sm:$0xff]   ;;  %v657_v35 = vld [vmem:[%s905_s7 + $0x10] sm:$0xff]  }
  0x23   :  { %v501_v36 = vld [vmem:[%s902_s4] ss:$0 sm:$0xff]  ;;  %v658_v45 = vld [vmem:[%s905_s7 + $0x8] sm:$0xff]  }
  0x24   :  { %564 = vmatmul.mubr.msk.bf16.vlgmr.msra.gmra.mxu0 %vm85_vm1, %v61_v5  ;;  %v659_v46 = vld [vmem:[%s905_s7] sm:$0xff]  }
  0x25   :  { %603 = vmatprep.mubr.msk.bf16.mxu0 %vm735_vm0, %v734_v0  ;;  %572 = vmatpush3.bf16.msra.mxu1 %v638_v7  ;;  %v510_v47 = vld [vmem:[%s904_s6] ss:$0 sm:$0xff]  ;;  %s736_s6 = smov [#allocation7]  }
  0x26   :  { %573 = vmatprep.subr.bf16.mxu1 %v734_v0  ;;  %588 = vmatpush3.bf16.msra.mxu0 %v644_v13  ;;  %v519_v56 = vld [vmem:[%s906_s8] ss:$0 sm:$0xff]  ;;  %s487_s7 = sshll.u32 %s736_s6, 4  ;;  %s488_s7 = int_to_ptr.vmem [resolvable:$true] %s487_s7 }
  0x27   :  { %589 = vmatprep.subr.bf16.mxu0 %v734_v0  ;;  %s704_s14 = scalar_lea.vmem %s488_s7, 128  ;;  %p709_p11 = scmp.lt.s32.totalorder %s488_s7, %s488_s7 }
  0x28   :  { %p705_p10 = scmp.ne.s32.totalorder %s488_s7, %s704_s14  ;;  %p710_p12 = scmp.lt.s32.totalorder %s704_s14, %s704_s14 }
  0x29   :  { %574 = vmatpush3.bf16.msra.mxu1 %v639_v8 }
  0x2a   :  { %575 = vmatprep.subr.bf16.mxu1 %v734_v0  ;;  %590 = vmatpush3.bf16.msra.mxu0 %v645_v14  ;;  %p711_p13 = por %p710_p12, %p709_p11 }
  0x2b   :  { %591 = vmatprep.subr.bf16.mxu0 %v734_v0 }
  0x2c   :  { %p712_p0 = pnand %p711_p13, %p705_p10 }
  0x2d   :  { %576 = vmatpush3.bf16.msra.mxu1 %v640_v9 }
  0x2e   :  { %577 = vmatprep.subr.bf16.mxu1 %v734_v0  ;;  %592 = vmatpush3.bf16.msra.mxu0 %v646_v15 }
  0x2f   :  { %593 = vmatprep.subr.bf16.mxu0 %v734_v0 }
  0x31   :  { %578 = vmatpush3.bf16.msra.mxu1 %v641_v10 }
  0x32   :  { %579 = vmatprep.subr.bf16.mxu1 %v734_v0  ;;  %594 = vmatpush3.bf16.msra.mxu0 %v647_v16 }
  0x33   :  { %595 = vmatprep.subr.bf16.mxu0 %v734_v0 }
  0x35   :  { %580 = vmatpush3.bf16.msra.mxu1 %v642_v11 }
  0x36   :  { %581 = vmatprep.subr.bf16.mxu1 %v734_v0  ;;  %596 = vmatpush3.bf16.msra.mxu0 %v648_v17 }
  0x37   :  { %597 = vmatprep.subr.bf16.mxu0 %v734_v0 }
  0x39   :  { %582 = vmatpush3.bf16.msra.mxu1 %v643_v12 }
  0x3a   :  { %607 = vmatprep.subr.bf16.mxu1 %v734_v0  ;;  %598 = vmatpush3.bf16.msra.mxu0 %v649_v18 }
  0x3b   :  { %599 = vmatprep.subr.bf16.mxu0 %v734_v0 }
  0x3e   :  { %600 = vmatpush3.bf16.msra.mxu0 %v650_v28 }
  0x3f   :  { %601 = vmatprep.subr.bf16.mxu0 %v734_v0 }
  0x42   :  { %602 = vmatpush3.bf16.msra.mxu0 %v651_v29 }
  0xe4   :  { %v123_v20 = vpop.f32.mrf.mxu0 }
  0xe5   :  { %v124_v21 = vadd.f32 %v497_v19, %v123_v20 }
  0xe6   :  { %v565_v22 = vpop.f32.mrf.mxu0 }
  0xe7   :  { %vm129_vm2 = vcmp.ge.f32.partialorder %v124_v21, 0.0  ;;  %v130_v23 = vmul.f32 0.01, %v124_v21 }
  0xe8   :  { %v126_v24 = vpop.f32.mrf.mxu0 }
  0xe9   :  { %v131_v25 = vsel %vm129_vm2, %v124_v21, %v130_v23 }
  0xea   :  { %v566_v26 = vpop.f32.mrf.mxu0  ;;  %v132_v27 = vpack.c.bf16 %v131_v25, %v131_v25 }
  0xec   :  { %584 = vmatmul.mubr.bf16.vlgmr.msra.gmra.mxu1 %v132_v27 }
  0xed   :  { %623 = vmatprep.mubr.msk.bf16.mxu1 %vm735_vm0, %v734_v0  ;;  %608 = vmatpush3.bf16.msra.mxu1 %v652_v30 }
  0xee   :  { %609 = vmatprep.subr.bf16.mxu1 %v734_v0 }
  0xf1   :  { %610 = vmatpush3.bf16.msra.mxu1 %v653_v31 }
  0xf2   :  { %611 = vmatprep.subr.bf16.mxu1 %v734_v0 }
  0xf5   :  { %612 = vmatpush3.bf16.msra.mxu1 %v654_v32 }
  0xf6   :  { %613 = vmatprep.subr.bf16.mxu1 %v734_v0 }
  0xf9   :  { %614 = vmatpush3.bf16.msra.mxu1 %v655_v33 }
  0xfa   :  { %615 = vmatprep.subr.bf16.mxu1 %v734_v0 }
  0xfd   :  { %616 = vmatpush3.bf16.msra.mxu1 %v656_v34 }
  0xfe   :  { %617 = vmatprep.subr.bf16.mxu1 %v734_v0 }
 0x101   :  { %618 = vmatpush3.bf16.msra.mxu1 %v657_v35 }
 0x102   :  { %619 = vmatprep.subr.bf16.mxu1 %v734_v0 }
 0x105   :  { %620 = vmatpush3.bf16.msra.mxu1 %v658_v45 }
 0x106   :  { %621 = vmatprep.subr.bf16.mxu1 %v734_v0 }
 0x109   :  { %622 = vmatpush3.bf16.msra.mxu1 %v659_v46 }
 0x1ac   :  { %v238_v37 = vpop.f32.mrf.mxu1 }
 0x1ad   :  { %v239_v38 = vadd.f32 %v501_v36, %v238_v37 }
 0x1ae   :  { %v585_v39 = vpop.f32.mrf.mxu1 }
 0x1af   :  { %vm244_vm3 = vcmp.ge.f32.partialorder %v239_v38, 0.0  ;;  %v245_v40 = vmul.f32 0.01, %v239_v38 }
 0x1b0   :  { %v241_v41 = vpop.f32.mrf.mxu1 }
 0x1b1   :  { %v246_v42 = vsel %vm244_vm3, %v239_v38, %v245_v40 }
 0x1b2   :  { %v247_v43 = vpack.c.bf16 %v246_v42, %v246_v42  ;;  %v586_v44 = vpop.f32.mrf.mxu1 }
 0x1b4   :  { %604 = vmatmul.mubr.bf16.vlgmr.msra.gmra.mxu0 %v247_v43 }
 0x274   :  { %v353_v48 = vpop.f32.mrf.mxu0 }
 0x275   :  { %v354_v49 = vadd.f32 %v510_v47, %v353_v48 }
 0x276   :  { %v605_v50 = vpop.f32.mrf.mxu0 }
 0x277   :  { %vm359_vm4 = vcmp.ge.f32.partialorder %v354_v49, 0.0  ;;  %v360_v51 = vmul.f32 0.01, %v354_v49 }
 0x278   :  { %v356_v52 = vpop.f32.mrf.mxu0 }
 0x279   :  { %v361_v53 = vsel %vm359_vm4, %v354_v49, %v360_v51 }
 0x27a   :  { %v362_v54 = vpack.c.bf16 %v361_v53, %v361_v53  ;;  %v606_v55 = vpop.f32.mrf.mxu0 }
 0x27c   :  { %624 = vmatmul.mubr.bf16.vlgmr.msra.gmra.mxu1 %v362_v54 }
 0x33c   :  { %v468_v57 = vpop.f32.mrf.mxu1 }
 0x33d   :  { %v469_v58 = vadd.f32 %v519_v56, %v468_v57 }
 0x33e   :  { %v625_v59 = vpop.f32.mrf.mxu1 }
 0x33f   :  { %v528_v60 = vmul.f32 -1.442695, %v469_v58 }
 0x340   :  { %v471_v61 = vpop.f32.mrf.mxu1 }
 0x341   :  { %660 = vpow2.f32 %v528_v60 }
 0x342   :  { %v626_v62 = vpop.f32.mrf.mxu1 }
 0x34e   :  { %v661_v63 = vpop.eup %660 }
 0x34f   :  { %v477_v0 = vadd.f32 1.0, %v661_v63 }
 0x351   :  { %662 = vrcp.f32 %v477_v0 }
 0x35e   :  { %v663_v1 = vpop.eup %662 }
 0x35f   :  { %480 = vst.msk [vmem:[#allocation7] sm:$0xff] %vm85_vm1, %v663_v1 }
 0x360   :  { %715 = shalt.err (!%p712_p0)
}
 0x361   :  { %490 = dma.vmem_to_hbm [thread:$0]  %s488_s7, 128, %s907_s9, [#allocation4]  }
 0x362   :  { %728 = dma.done.wait [#allocation4], 128  }
 0x363   :  { %729 = vsyncadd [#allocation4], 4294967168 }
 0x364   :  { %494 = vsyncpa [#allocation3], 1 }
 0x365   :  { %495 = vsyncpa [#allocation6], 1 }
 0x366   :  { %496 = vsyncpa [#allocation4], 1 }

</bundles_post_ra>
